<compile_context>
chip_gen: v5e
topology: v5e:2x2
jax: 0.10.0
libtpu: 0.0.40
codegen_flags: <defaults>
</compile_context>

<pallas_src>
import jax
import jax.numpy as jnp
from jax.experimental import pallas as pl
from jax.experimental.pallas import tpu as pltpu


def _se_block_kernel(x_ref, w1_ref, b1_ref, w2_ref, b2_ref, o_ref):
    """One batch tile. x_ref / o_ref: (TB, H, C) channel-last.

    w1_ref: (C, Cr), b1_ref: (1, Cr), w2_ref: (Cr, C), b2_ref: (1, C) — all
    VMEM-resident (constant index_map), so no per-step weight DMA.
    """
    x = x_ref[...]                                         # native dtype (TB, H, C)

    # Squeeze: global average pool over H (sublane axis), f32 accumulation.
    inv_h = 1.0 / x_ref.shape[1]
    s = jnp.sum(x, axis=1, dtype=jnp.float32) * inv_h      # (TB, C)

    # Tiny excitation MLP in f32 (negligible FLOPs; batched over the whole tile
    # so one MXU push per grid step instead of per batch element).
    h = jnp.dot(s, w1_ref[...], preferred_element_type=jnp.float32) + b1_ref[...]
    h = jnp.maximum(h, 0.0)                                 # (TB, Cr)
    g = jnp.dot(h, w2_ref[...], preferred_element_type=jnp.float32) + b2_ref[...]
    g = jax.nn.sigmoid(g)                                   # (TB, C)

    # Excite: per-channel scale broadcast over H (sublanes); lane-dense store.
    o_ref[...] = (x * g.astype(x.dtype)[:, None, :]).astype(o_ref.dtype)


def se_block(x, w1, b1, w2, b2, *, batch_tile=None):
    """SEBlock forward.

    x: (B, C, H); torch nn.Linear params: w1 (Cr, C), b1 (Cr,), w2 (C, Cr), b2 (C,).
    Returns (B, C, H), same dtype as x.
    """
    B, C, H = x.shape
    Cr = w1.shape[0]

    # Channel-last inside the kernel (C on lanes). Wrapper transposes keep the
    # external NCH API; in a real pipeline the producer/consumer would already
    # be channel-last and these transposes disappear.
    x_nhc = jnp.transpose(x, (0, 2, 1))                     # (B, H, C)
    w1_t = jnp.transpose(w1)                                # (C, Cr)
    w2_t = jnp.transpose(w2)                                # (Cr, C)
    b1_2d = b1.reshape(1, Cr)
    b2_2d = b2.reshape(1, C)

    itemsize = jnp.dtype(x.dtype).itemsize
    per_batch_bytes = H * C * itemsize

    if batch_tile is None:
        # Keep each streamed block <= ~4 MiB so 2x double-buffered input +
        # 2x double-buffered output + weights stays well under v7x's 64 MiB
        # physical / 32 MiB default scoped VMEM (and comfortably on v5e/v6e).
        budget = 4 * 1024 * 1024
        batch_tile = max(1, min(B, budget // max(per_batch_bytes, 1)))
    batch_tile = max(1, min(batch_tile, B))
    while B % batch_tile != 0:                              # exact grid, no masking
        batch_tile -= 1

    # Note: if a single per-batch (H, C) slab ever exceeds the VMEM budget,
    # the right fallback is a two-pass form (GAP+MLP kernel emitting g, then a
    # pure scale kernel tiled over H) rather than growing this block.
    grid = (B // batch_tile,)
    block_bytes = batch_tile * per_batch_bytes
    vmem_limit = int(min(60 * 1024 * 1024,
                         max(24 * 1024 * 1024, 5 * block_bytes + 2 * 1024 * 1024)))

    cost = pl.CostEstimate(
        flops=int(2 * B * C * Cr * 2 + 2 * B * C * H),
        transcendentals=int(B * C),
        bytes_accessed=int(2 * B * H * C * itemsize + (2 * C * Cr + C + Cr) * 4),
    )

    out_nhc = pl.pallas_call(
        _se_block_kernel,
        out_shape=jax.ShapeDtypeStruct((B, H, C), x.dtype),
        grid=grid,
        in_specs=[
            pl.BlockSpec((batch_tile, H, C), lambda b: (b, 0, 0)),  # streamed x tile
            pl.BlockSpec((C, Cr), lambda b: (0, 0)),                # VMEM-resident weights
            pl.BlockSpec((1, Cr), lambda b: (0, 0)),
            pl.BlockSpec((Cr, C), lambda b: (0, 0)),
            pl.BlockSpec((1, C), lambda b: (0, 0)),
        ],
        out_specs=pl.BlockSpec((batch_tile, H, C), lambda b: (b, 0, 0)),
        compiler_params=pltpu.CompilerParams(
            dimension_semantics=("parallel",),   # shard batch grid across v7x's 2 TCs
            vmem_limit_bytes=vmem_limit,
        ),
        cost_estimate=cost,
    )(x_nhc, w1_t, b1_2d, w2_t, b2_2d)

    return jnp.transpose(out_nhc, (0, 2, 1))                # back to (B, C, H)


def se_block_ref(x, w1, b1, w2, b2):
    s = jnp.mean(x, axis=-1)
    h = jnp.maximum(s @ w1.T + b1, 0.0)
    g = jax.nn.sigmoid(h @ w2.T + b2)
    return x * g[:, :, None]


if __name__ == "__main__":
    B, C, H = 2, 32, 16
    reduction = 16
    Cr = C // reduction  # 2

    key = jax.random.PRNGKey(0)
    kx, kw1, kb1, kw2, kb2 = jax.random.split(key, 5)

    x = jax.random.normal(kx, (B, C, H), dtype=jnp.float32)
    # torch nn.Linear shapes: weight (out, in), bias (out,)
    w1 = jax.random.normal(kw1, (Cr, C), dtype=jnp.float32) * 0.1
    b1 = jax.random.normal(kb1, (Cr,), dtype=jnp.float32) * 0.1
    w2 = jax.random.normal(kw2, (C, Cr), dtype=jnp.float32) * 0.1
    b2 = jax.random.normal(kb2, (C,), dtype=jnp.float32) * 0.1

    out = jax.block_until_ready(se_block(x, w1, b1, w2, b2))
    ref = se_block_ref(x, w1, b1, w2, b2)

    assert out.shape == (B, C, H)
    assert jnp.allclose(out, ref, atol=1e-5, rtol=1e-5), "mismatch vs reference"

    print("KERNEL_OK")
</pallas_src>

<mosaic_0001>
module attributes {stable_mosaic.version = 11 : i64} {
  func.func @_se_block_kernel(%arg0: i32, %arg1: memref<2x16x32xf32, #tpu.memory_space<vmem>>, %arg2: memref<32x2xf32, #tpu.memory_space<vmem>>, %arg3: memref<1x2xf32, #tpu.memory_space<vmem>>, %arg4: memref<2x32xf32, #tpu.memory_space<vmem>>, %arg5: memref<1x32xf32, #tpu.memory_space<vmem>>, %arg6: memref<2x16x32xf32, #tpu.memory_space<vmem>>) attributes {dimension_semantics = [#tpu.dimension_semantics<parallel>], iteration_bounds = array<i64: 1>, scalar_prefetch = 0 : i64, scratch_operands = 0 : i64, tpu.core_type = #tpu.core_type<tc>, window_params = [{transform_indices = @transform_0, window_bounds = array<i64: 2, 16, 32>}, {pipeline_mode = #tpu.pipeline_mode<synchronous>, transform_indices = @transform_1, window_bounds = array<i64: 32, 2>}, {pipeline_mode = #tpu.pipeline_mode<synchronous>, transform_indices = @transform_2, window_bounds = array<i64: 1, 2>}, {pipeline_mode = #tpu.pipeline_mode<synchronous>, transform_indices = @transform_3, window_bounds = array<i64: 2, 32>}, {pipeline_mode = #tpu.pipeline_mode<synchronous>, transform_indices = @transform_4, window_bounds = array<i64: 1, 32>}, {transform_indices = @transform_5, window_bounds = array<i64: 2, 16, 32>}]} {
    %c0 = arith.constant 0 : index
    %c0_0 = arith.constant 0 : index
    %c0_1 = arith.constant 0 : index
    %0 = vector.load %arg1[%c0, %c0_0, %c0_1] : memref<2x16x32xf32, #tpu.memory_space<vmem>>, vector<2x16x32xf32>
    %cst = arith.constant dense<0.000000e+00> : vector<2x32xf32>
    %1 = vector.multi_reduction <add>, %0, %cst [1] : vector<2x16x32xf32> to vector<2x32xf32>
    %cst_2 = arith.constant 6.250000e-02 : f32
    %2 = vector.broadcast %cst_2 : f32 to vector<2x32xf32>
    %3 = arith.mulf %1, %2 : vector<2x32xf32>
    %c0_3 = arith.constant 0 : index
    %c0_4 = arith.constant 0 : index
    %4 = vector.load %arg2[%c0_3, %c0_4] : memref<32x2xf32, #tpu.memory_space<vmem>>, vector<32x2xf32>
    %cst_5 = arith.constant dense<0.000000e+00> : vector<2x2xf32>
    %5 = tpu.matmul %3, %4, %cst_5 {dimension_numbers = #tpu.dot_dimension_numbers<[1], [0], [0], [1], [0, 0, 1, 1], [], []>} : vector<2x32xf32>, vector<32x2xf32>, vector<2x2xf32> -> vector<2x2xf32>
    %c0_6 = arith.constant 0 : index
    %c0_7 = arith.constant 0 : index
    %6 = vector.load %arg3[%c0_6, %c0_7] : memref<1x2xf32, #tpu.memory_space<vmem>>, vector<1x2xf32>
    %7 = vector.broadcast %6 : vector<1x2xf32> to vector<2x2xf32>
    %8 = arith.addf %5, %7 : vector<2x2xf32>
    %cst_8 = arith.constant 0.000000e+00 : f32
    %9 = vector.broadcast %cst_8 : f32 to vector<2x2xf32>
    %10 = arith.maximumf %8, %9 : vector<2x2xf32>
    %c0_9 = arith.constant 0 : index
    %c0_10 = arith.constant 0 : index
    %11 = vector.load %arg4[%c0_9, %c0_10] : memref<2x32xf32, #tpu.memory_space<vmem>>, vector<2x32xf32>
    %cst_11 = arith.constant dense<0.000000e+00> : vector<2x32xf32>
    %12 = tpu.matmul %10, %11, %cst_11 {dimension_numbers = #tpu.dot_dimension_numbers<[1], [0], [0], [1], [0, 0, 1, 1], [], []>} : vector<2x2xf32>, vector<2x32xf32>, vector<2x32xf32> -> vector<2x32xf32>
    %c0_12 = arith.constant 0 : index
    %c0_13 = arith.constant 0 : index
    %13 = vector.load %arg5[%c0_12, %c0_13] : memref<1x32xf32, #tpu.memory_space<vmem>>, vector<1x32xf32>
    %14 = vector.broadcast %13 : vector<1x32xf32> to vector<2x32xf32>
    %15 = arith.addf %12, %14 : vector<2x32xf32>
    %16 = arith.negf %15 : vector<2x32xf32>
    %17 = math.exp %16 : vector<2x32xf32>
    %cst_14 = arith.constant 1.000000e+00 : f32
    %18 = vector.broadcast %cst_14 : f32 to vector<2x32xf32>
    %19 = arith.addf %18, %17 : vector<2x32xf32>
    %20 = arith.divf %18, %19 : vector<2x32xf32>
    %21 = vector.shape_cast %20 : vector<2x32xf32> to vector<2x1x32xf32>
    %22 = vector.broadcast %21 : vector<2x1x32xf32> to vector<2x16x32xf32>
    %23 = arith.mulf %0, %22 : vector<2x16x32xf32>
    %c0_15 = arith.constant 0 : index
    %c0_16 = arith.constant 0 : index
    %c0_17 = arith.constant 0 : index
    %24 = vector.load %arg6[%c0_15, %c0_16, %c0_17] : memref<2x16x32xf32, #tpu.memory_space<vmem>>, vector<2x16x32xf32>
    tpu.vector_store %arg6[%c0_15, %c0_16, %c0_17], %23 {strides = array<i32>} : memref<2x16x32xf32, #tpu.memory_space<vmem>>, vector<2x16x32xf32>,
    return
  }
  func.func @transform_0(%arg0: i32) -> (i32, i32, i32) {
    %c0_i32 = arith.constant 0 : i32
    %c0_i32_0 = arith.constant 0 : i32
    %c0_i32_1 = arith.constant 0 : i32
    return %arg0, %c0_i32, %c0_i32_0 : i32, i32, i32
  }
  func.func @transform_1(%arg0: i32) -> (i32, i32) {
    %c0_i32 = arith.constant 0 : i32
    %c0_i32_0 = arith.constant 0 : i32
    %c0_i32_1 = arith.constant 0 : i32
    return %c0_i32, %c0_i32_0 : i32, i32
  }
  func.func @transform_2(%arg0: i32) -> (i32, i32) {
    %c0_i32 = arith.constant 0 : i32
    %c0_i32_0 = arith.constant 0 : i32
    %c0_i32_1 = arith.constant 0 : i32
    return %c0_i32, %c0_i32_0 : i32, i32
  }
  func.func @transform_3(%arg0: i32) -> (i32, i32) {
    %c0_i32 = arith.constant 0 : i32
    %c0_i32_0 = arith.constant 0 : i32
    %c0_i32_1 = arith.constant 0 : i32
    return %c0_i32, %c0_i32_0 : i32, i32
  }
  func.func @transform_4(%arg0: i32) -> (i32, i32) {
    %c0_i32 = arith.constant 0 : i32
    %c0_i32_0 = arith.constant 0 : i32
    %c0_i32_1 = arith.constant 0 : i32
    return %c0_i32, %c0_i32_0 : i32, i32
  }
  func.func @transform_5(%arg0: i32) -> (i32, i32, i32) {
    %c0_i32 = arith.constant 0 : i32
    %c0_i32_0 = arith.constant 0 : i32
    %c0_i32_1 = arith.constant 0 : i32
    return %arg0, %c0_i32, %c0_i32_0 : i32, i32, i32
  }
}

</mosaic_0001>

<bundles_post_ra>
// kernel: tpu_custom_call.1
= control target key start
LH: loop header
LB: loop body
LE: loop exit
PB: predicated region body
PF: predicated region fallthrough
CT: control target
= control target key end

     0   :  { %vm25_vm0 = vcmask 261120   ;;  %s298_s0 = inlined_call_operand.vmem [shape: f32[2,16,32], index: 0, kind: input, shape index: {}]   ;;  %s299_s1 = inlined_call_operand.vmem [shape: f32[32,2], index: 1, kind: input, shape index: {}]   ;;  %s300_s2 = inlined_call_operand.vmem [shape: f32[1,2], index: 2, kind: input, shape index: {}]   ;;  %s301_s3 = inlined_call_operand.vmem [shape: f32[2,32], index: 3, kind: input, shape index: {}]   ;;  %s302_s4 = inlined_call_operand.vmem [shape: f32[1,32], index: 4, kind: input, shape index: {}]   ;;  %s303_s5 = inlined_call_operand.hbm [shape: f32[2,16,32], index: 5, kind: output, shape index: {}]  }
   0x1   :  { %v49_v0 = vld [vmem:[%s299_s1 + $0x18] sm:$0xff]  ;;  %v48_v1 = vld [vmem:[%s299_s1 + $0x10] sm:$0xff]  ;;  %v47_v2 = vld [vmem:[%s299_s1 + $0x8] sm:$0xff] }
   0x2   :  { %72 = vmatpush.msra.mxu0 %v49_v0  ;;  %v249_v3 = vld [vmem:[%s298_s0] sm:$0xff]  ;;  %v254_v4 = vld [vmem:[%s298_s0 + $0x8] sm:$0xff]  ;;  %v259_v5 = vld [vmem:[%s298_s0 + $0x10] sm:$0xff] }
   0x3   :  { %v264_v6 = vld [vmem:[%s298_s0 + $0x18] sm:$0xff]  ;;  %v26_v7 = vsel %vm25_vm0, %v249_v3, 0.0  ;;  %v27_v8 = vsel %vm25_vm0, %v254_v4, 0.0  ;;  %v35_v10 = vsel %vm25_vm0, %v259_v5, 0.0  ;;  %v46_v12 = vld [vmem:[%s299_s1] sm:$0xff] }
   0x4   :  { %73 = vmatpush.msra.mxu0 %v48_v1  ;;  %v28_v9 = vadd.f32 %v27_v8, %v26_v7  ;;  %v36_v11 = vsel %vm25_vm0, %v264_v6, 0.0 }
   0x5   :  { %v37_v13 = vadd.f32 %v36_v11, %v35_v10 }
   0x6   :  { %10 = vsyncpa [#allocation3], 0  ;;  %74 = vmatpush.msra.mxu0 %v47_v2  ;;  %v29_v14 = vrot.slane %v28_v9, 4  ;;  %vm56_vm1 = vcmask 1041409   ;;  %v81_v29 = vld [vmem:[%s301_s3] sm:$0x3] }
   0x7   :  { %v38_v15 = vrot.slane %v37_v13, 4  ;;  %vm90_vm2 = vcmask 1041408   ;;  %v172_v30 = vld [vmem:[%s300_s2] ss:$0 sm:$0xff]  ;;  %vm86_vm3 = vcmask 15360   ;;  %s204_s2 = smov [#allocation2]  }
   0x8   :  { %75 = vmatpush.msra.mxu0 %v46_v12  ;;  %v30_v16 = vadd.f32 %v29_v14, %v28_v9  ;;  %166 = vmatpush.msk.msra.mxu1 %vm90_vm2, %v81_v29  ;;  %v173_v34 = vld [vmem:[%s302_s4] ss:$0 sm:$0xff]  ;;  %s151_s3 = sshll.u32 %s204_s2, 4  ;;  %s153_s14 = sshll.u32 %s303_s5, 4  ;;  %s152_s3 = int_to_ptr.vmem [resolvable:$true] %s151_s3  ;;  %s154_s14 = int_to_ptr.hbm [resolvable:$true] %s153_s14 }
   0x9   :  { %v39_v17 = vadd.f32 %v38_v15, %v37_v13  ;;  %s205_s5 = smov 128   ;;  %s206_s15 = smov 8  }
   0xa   :  { %v31_v18 = vrot.slane %v30_v16, 2 }
   0xb   :  { %v40_v19 = vrot.slane %v39_v17, 2 }
   0xc   :  { %v32_v20 = vadd.f32 %v31_v18, %v30_v16 }
   0xd   :  { %v41_v21 = vadd.f32 %v40_v19, %v39_v17 }
   0xe   :  { %v33_v22 = vrot.slane %v32_v20, 1 }
   0xf   :  { %v42_v23 = vrot.slane %v41_v21, 1 }
  0x10   :  { %v34_v24 = vadd.f32 %v33_v22, %v32_v20 }
  0x11   :  { %v43_v25 = vadd.f32 %v42_v23, %v41_v21 }
  0x12   :  { %v44_v26 = vmul.f32 0.0625, %v34_v24 }
  0x13   :  { %v45_v27 = vmul.f32 0.0625, %v43_v25 }
  0x15   :  { %v57_v28 = vsel %vm56_vm1, %v45_v27, %v44_v26 }
  0x16   :  { %165 = vmatmul.msk.f32.vlgmr.msra.gmra.mxu0 %vm25_vm0, %v57_v28 }
  0x93   :  { %v77_v31 = vpop.f32.mrf.mxu0 }
  0x94   :  { %v78_v32 = vadd.f32 %v172_v30, %v77_v31 }
  0x96   :  { %v80_v33 = vmax.f32 %v78_v32, 0.0 }
  0x98   :  { %167 = vmatmul.msk.f32.vlgmr.msra.gmra.mxu1 %vm86_vm3, %v80_v33 }
 0x115   :  { %v111_v35 = vpop.f32.mrf.mxu1 }
 0x116   :  { %v112_v36 = vadd.f32 %v173_v34, %v111_v35 }
 0x118   :  { %v168_v37 = vmul.f32 -1.442695, %v112_v36 }
 0x11a   :  { %174 = vpow2.f32 %v168_v37 }
 0x120   :  { %v175_v38 = vpop.eup %174 }
 0x121   :  { %v117_v39 = vadd.f32 1.0, %v175_v38 }
 0x123   :  { %176 = vrcp.f32 %v117_v39  ;;  %v129_v43 = vand.u32 2147483648, %v117_v39  ;;  %v127_v45 = vand.u32 2147483647, %v117_v39  ;;  %vm123_vm5 = vweird.f32 %v117_v39 }
 0x125   :  { %v130_v47 = vor.u32 1.1754944e-38, %v129_v43  ;;  %vm128_vm7 = vcmp.eq.f32.partialorder %v127_v45, 8.507059e+37 }
 0x129   :  { %v177_v40 = vpop.eup %176 }
 0x12a   :  { %v119_v41 = vmul.f32 %v177_v40, %v117_v39  ;;  %vm124_vm4 = vweird.f32 %v177_v40 }
 0x12b   :  { %vm125_vm6 = vmor %vm123_vm5, %vm124_vm4 }
 0x12c   :  { %v120_v42 = vsub.f32 1.0, %v119_v41 }
 0x12e   :  { %v121_v44 = vmul.f32 %v177_v40, %v120_v42 }
 0x130   :  { %v122_v46 = vadd.f32 %v177_v40, %v121_v44 }
 0x132   :  { %v126_v48 = vsel %vm125_vm6, %v177_v40, %v122_v46 }
 0x133   :  { %v131_v49 = vsel %vm128_vm7, %v130_v47, %v126_v48 }
 0x134   :  { %v134_v50 = vrot.slane %v131_v49, 1  ;;  %v135_v51 = vperm.slane %v131_v49, 0 }
 0x136   :  { %v136_v52 = vperm.slane %v134_v50, 0  ;;  %v139_v53 = vmul.f32 %v135_v51, %v249_v3  ;;  %v140_v54 = vmul.f32 %v135_v51, %v254_v4 }
 0x138   :  { %143 = vst.msk [vmem:[#allocation2] sm:$0xff] %vm25_vm0, %v139_v53  ;;  %v141_v55 = vmul.f32 %v136_v52, %v259_v5  ;;  %v142_v56 = vmul.f32 %v136_v52, %v264_v6 }
 0x139   :  { %144 = vst.msk [vmem:[#allocation2 + $0x8] sm:$0xff] %vm25_vm0, %v140_v54 }
 0x13a   :  { %145 = vst.msk [vmem:[#allocation2 + $0x10] sm:$0xff] %vm25_vm0, %v141_v55 }
 0x13b   :  { %146 = vst.msk [vmem:[#allocation2 + $0x18] sm:$0xff] %vm25_vm0, %v142_v56 }
 0x13c   :  { %159 = dma.vmem_to_hbm [thread:$0]  %s152_s3, 512, %s154_s14, [#allocation3], %s205_s5, %s205_s5, %s206_s15  }
 0x13d   :  { %202 = dma.done.wait [#allocation3], 512  }
 0x13e   :  { %203 = vsyncadd [#allocation3], 4294966784 }
 0x13f   :  { %164 = vsyncpa [#allocation3], 1 }

</bundles_post_ra>
